<compile_context>
chip_gen: v6e
topology: v6e:2x2x1
jax: 0.10.0
libtpu: 0.0.40
codegen_flags: <defaults>
</compile_context>

<pallas_src>
import jax
import jax.numpy as jnp
from jax.experimental import pallas as pl
from jax.experimental.pallas import tpu as pltpu

LANE = 128
GRANULE = 16                       # batch-tile granule (covers f32 and bf16 tiling)
VMEM_TILE_BUDGET = 40 * 1024 * 1024


def _round_up(n, m):
    return ((n + m - 1) // m) * m


def _cdiv(a, b):
    return -(-a // b)


def _time_mlp_kernel(
    xt_ref,                       # [TB, Kp]  packed [x | t | zeros], f32
    we0_ref, be0_ref,             # embedding Linear(1, H): [Kp, Hp] (only t row nonzero), [1, Hp]
    we1_ref, be1_ref,             # embedding Linear(H, t_dim): [Hp, Tp], [1, Tp]
    w0x_ref, w0t_ref, b0_ref,     # net L0 (concat-free): [Kp, Hp], [Tp, Hp], [1, Hp]
    w1_ref, b1_ref,               # net L1: [Hp, Hp], [1, Hp]
    w2_ref, b2_ref,               # net L2: [Hp, Op], [1, Op]
    o_ref,                        # [TB, Op]
):
    f32 = jnp.float32
    wd = w1_ref.dtype             # MXU operand dtype (bf16 default); accumulation stays f32

    xt = xt_ref[...].astype(wd)   # cast once; reused by the embedding and net layer 0

    # ---- time embedding: Linear(1, H) via the packed input (only the t row of we0 is nonzero) ----
    h = jnp.dot(xt, we0_ref[...], preferred_element_type=f32) + be0_ref[...]
    h = jnp.maximum(h, 0.0).astype(wd)
    t_emb = (jnp.dot(h, we1_ref[...], preferred_element_type=f32) + be1_ref[...]).astype(wd)

    # ---- net layer 0: concat-free  (x | t_emb) @ w0 = x@w0_x + t_emb@w0_t ----
    h = (jnp.dot(xt, w0x_ref[...], preferred_element_type=f32)
         + jnp.dot(t_emb, w0t_ref[...], preferred_element_type=f32)
         + b0_ref[...])
    h = jnp.maximum(h, 0.0).astype(wd)

    # ---- net layer 1 ----
    h = jnp.dot(h, w1_ref[...], preferred_element_type=f32) + b1_ref[...]
    h = jnp.maximum(h, 0.0).astype(wd)

    # ---- net layer 2 (output columns padded to Op -> lane-dense unmasked store) ----
    out = jnp.dot(h, w2_ref[...], preferred_element_type=f32) + b2_ref[...]
    o_ref[...] = out.astype(o_ref.dtype)


def time_embedded_mlp(x, t_index, params, *, block_batch=4096,
                      weights_dtype=jnp.bfloat16, out_dtype=None):
    """x: [B, x_dim] f32, t_index: [B, 1] (int or float), params: dict of (in,out) weights."""
    B, x_dim = x.shape
    hidden_dim = params["we0"].shape[1]
    t_dim = params["we1"].shape[1]

    f32 = jnp.float32
    wd = jnp.dtype(weights_dtype)
    od = jnp.dtype(out_dtype) if out_dtype is not None else jnp.dtype(x.dtype)

    Hp = _round_up(hidden_dim, LANE)     # padded hidden width
    Tp = _round_up(t_dim, LANE)          # padded time-embedding width
    Op = _round_up(x_dim, LANE)          # padded output width (lane-dense stores)
    Kp = _round_up(x_dim + 1, LANE)      # packed [x | t] input width

    def pad2(a, rows, cols, dtype):
        return jnp.zeros((rows, cols), dtype).at[: a.shape[0], : a.shape[1]].set(
            a.astype(dtype))

    # Zero padding keeps every padded row/column an exact zero through the net.
    we0 = jnp.zeros((Kp, Hp), wd).at[x_dim:x_dim + 1, :hidden_dim].set(
        params["we0"].astype(wd))                           # only the t row is nonzero
    be0 = pad2(params["be0"], 1, Hp, f32)
    we1 = pad2(params["we1"], Hp, Tp, wd)
    be1 = pad2(params["be1"], 1, Tp, f32)
    w0x = pad2(params["w0"][:x_dim], Kp, Hp, wd)            # x rows; t row / padding stay zero
    w0t = pad2(params["w0"][x_dim:], Tp, Hp, wd)            # t_emb half
    b0 = pad2(params["b0"], 1, Hp, f32)
    w1 = pad2(params["w1"], Hp, Hp, wd)
    b1 = pad2(params["b1"], 1, Hp, f32)
    w2 = pad2(params["w2"], Hp, Op, wd)
    b2 = pad2(params["b2"], 1, Op, f32)

    # ---- batch-tile selection: sublane granule, VMEM budget, even grid (v7x megacore) ----
    Bp0 = _round_up(B, GRANULE)
    TB = _round_up(max(GRANULE, min(block_batch, Bp0)), GRANULE)

    bytes_per_row = (2 * Kp * 4                      # packed input tile, double-buffered f32
                     + 2 * Op * od.itemsize          # output tile, double-buffered
                     + 4 * max(Hp, Tp, Op) * 4)      # live f32 intermediates
    while TB > GRANULE and TB * bytes_per_row > VMEM_TILE_BUDGET:
        TB = _round_up(TB // 2, GRANULE)

    n_steps = _cdiv(Bp0, TB)
    if n_steps > 1 and n_steps % 2 == 1:
        n_steps += 1                                 # even grid -> both v7x TCs get work
        TB = _round_up(_cdiv(Bp0, n_steps), GRANULE)
    Bp = n_steps * TB

    # Lane-dense packed activation tile: [x | t | zeros] per row.
    xt = jnp.zeros((Bp, Kp), f32)
    xt = xt.at[:B, :x_dim].set(x.astype(f32))
    xt = xt.at[:B, x_dim].set(t_index.astype(f32)[:, 0])

    grid = (n_steps,)

    def const_spec(a):
        # Constant block index -> weights stay resident in VMEM across grid steps.
        return pl.BlockSpec(a.shape, lambda i: (0, 0))

    weight_args = (we0, be0, we1, be1, w0x, w0t, b0, w1, b1, w2, b2)
    in_specs = [pl.BlockSpec((TB, Kp), lambda i: (i, 0))] + [const_spec(a) for a in weight_args]
    out_specs = pl.BlockSpec((TB, Op), lambda i: (i, 0))

    flops = 2 * Bp * (Kp * Hp + Hp * Tp + (Kp + Tp) * Hp + Hp * Hp + Hp * Op)
    bytes_accessed = (xt.size * 4
                      + sum(a.size * a.dtype.itemsize for a in weight_args)
                      + Bp * Op * od.itemsize)

    out_padded = pl.pallas_call(
        _time_mlp_kernel,
        out_shape=jax.ShapeDtypeStruct((Bp, Op), od),
        grid=grid,
        in_specs=in_specs,
        out_specs=out_specs,
        compiler_params=pltpu.CompilerParams(
            dimension_semantics=("parallel",),        # megacore sharding on v7x
            vmem_limit_bytes=48 * 1024 * 1024,        # within v7x's 64 MiB physical VMEM
        ),
        cost_estimate=pl.CostEstimate(
            flops=flops, transcendentals=0, bytes_accessed=bytes_accessed),
    )(xt, *weight_args)

    return out_padded[:B, :x_dim]


def init_params(key, x_dim, t_dim, hidden_dim):
    """Deterministic synthetic params. Weights stored as [in, out]; biases as [1, out]."""
    ks = jax.random.split(key, 10)

    def lin(kw, kb, n_in, n_out):
        w = jax.random.normal(kw, (n_in, n_out), jnp.float32) * (1.0 / jnp.sqrt(n_in))
        b = jax.random.normal(kb, (1, n_out), jnp.float32) * 0.01
        return w, b

    p = {}
    p["we0"], p["be0"] = lin(ks[0], ks[1], 1, hidden_dim)
    p["we1"], p["be1"] = lin(ks[2], ks[3], hidden_dim, t_dim)
    p["w0"], p["b0"] = lin(ks[4], ks[5], x_dim + t_dim, hidden_dim)
    p["w1"], p["b1"] = lin(ks[6], ks[7], hidden_dim, hidden_dim)
    p["w2"], p["b2"] = lin(ks[8], ks[9], hidden_dim, x_dim)
    return p


def reference_forward(x, t_index, p):
    """Plain-JAX reference mirroring the PyTorch forward."""
    relu = lambda v: jnp.maximum(v, 0.0)
    t = t_index.astype(jnp.float32)
    # Linear(1, H) written as a broadcast; identical to t @ we0 since K == 1.
    t_emb = relu(t * p["we0"] + p["be0"]) @ p["we1"] + p["be1"]
    xt = jnp.concatenate([x, t_emb], axis=-1)
    h = relu(xt @ p["w0"] + p["b0"])
    h = relu(h @ p["w1"] + p["b1"])
    return h @ p["w2"] + p["b2"]


if __name__ == "__main__":
    B, x_dim, t_dim, hidden_dim = 8, 4, 16, 32

    key = jax.random.PRNGKey(0)
    k_x, k_t, k_p, k_x2, k_t2 = jax.random.split(key, 5)

    x = jax.random.normal(k_x, (B, x_dim), jnp.float32)
    t_index = jax.random.randint(k_t, (B, 1), 0, 100, jnp.int32)
    params = init_params(k_p, x_dim, t_dim, hidden_dim)

    ref = reference_forward(x, t_index, params)

    # f32-weight path: exactness check against the reference.
    out_f32 = jax.block_until_ready(
        time_embedded_mlp(x, t_index, params, weights_dtype=jnp.float32))
    assert out_f32.shape == (B, x_dim)
    assert jnp.allclose(out_f32, ref, atol=1e-3, rtol=1e-3), "f32 mismatch vs reference"

    # Default bf16-weight path (MXU-native on every generation): bounded relative error.
    out_bf16 = jax.block_until_ready(time_embedded_mlp(x, t_index, params))
    assert out_bf16.shape == (B, x_dim)
    rel = jnp.linalg.norm(out_bf16 - ref) / (jnp.linalg.norm(ref) + 1e-6)
    assert bool(rel < 0.05), f"bf16 relative error too large: {rel}"

    # Multi-tile path (forces an even, >1 grid) to exercise the batch tiling logic.
    B2 = 100
    x2 = jax.random.normal(k_x2, (B2, x_dim), jnp.float32)
    t2 = jax.random.randint(k_t2, (B2, 1), 0, 100, jnp.int32)
    ref2 = reference_forward(x2, t2, params)
    out2 = jax.block_until_ready(
        time_embedded_mlp(x2, t2, params, block_batch=48, weights_dtype=jnp.float32))
    assert out2.shape == (B2, x_dim)
    assert jnp.allclose(out2, ref2, atol=1e-3, rtol=1e-3), "tiled f32 mismatch vs reference"

    print("KERNEL_OK")
</pallas_src>

<mosaic_0001>
module attributes {stable_mosaic.version = 11 : i64} {
  func.func @_time_mlp_kernel(%arg0: i32, %arg1: memref<16x128xf32, #tpu.memory_space<vmem>>, %arg2: memref<128x128xf32, #tpu.memory_space<vmem>>, %arg3: memref<1x128xf32, #tpu.memory_space<vmem>>, %arg4: memref<128x128xf32, #tpu.memory_space<vmem>>, %arg5: memref<1x128xf32, #tpu.memory_space<vmem>>, %arg6: memref<128x128xf32, #tpu.memory_space<vmem>>, %arg7: memref<128x128xf32, #tpu.memory_space<vmem>>, %arg8: memref<1x128xf32, #tpu.memory_space<vmem>>, %arg9: memref<128x128xf32, #tpu.memory_space<vmem>>, %arg10: memref<1x128xf32, #tpu.memory_space<vmem>>, %arg11: memref<128x128xf32, #tpu.memory_space<vmem>>, %arg12: memref<1x128xf32, #tpu.memory_space<vmem>>, %arg13: memref<16x128xf32, #tpu.memory_space<vmem>>) attributes {dimension_semantics = [#tpu.dimension_semantics<parallel>], iteration_bounds = array<i64: 1>, scalar_prefetch = 0 : i64, scratch_operands = 0 : i64, tpu.core_type = #tpu.core_type<tc>, window_params = [{transform_indices = @transform_0, window_bounds = array<i64: 16, 128>}, {pipeline_mode = #tpu.pipeline_mode<synchronous>, transform_indices = @transform_1, window_bounds = array<i64: 128, 128>}, {pipeline_mode = #tpu.pipeline_mode<synchronous>, transform_indices = @transform_2, window_bounds = array<i64: 1, 128>}, {pipeline_mode = #tpu.pipeline_mode<synchronous>, transform_indices = @transform_3, window_bounds = array<i64: 128, 128>}, {pipeline_mode = #tpu.pipeline_mode<synchronous>, transform_indices = @transform_4, window_bounds = array<i64: 1, 128>}, {pipeline_mode = #tpu.pipeline_mode<synchronous>, transform_indices = @transform_5, window_bounds = array<i64: 128, 128>}, {pipeline_mode = #tpu.pipeline_mode<synchronous>, transform_indices = @transform_6, window_bounds = array<i64: 128, 128>}, {pipeline_mode = #tpu.pipeline_mode<synchronous>, transform_indices = @transform_7, window_bounds = array<i64: 1, 128>}, {pipeline_mode = #tpu.pipeline_mode<synchronous>, transform_indices = @transform_8, window_bounds = array<i64: 128, 128>}, {pipeline_mode = #tpu.pipeline_mode<synchronous>, transform_indices = @transform_9, window_bounds = array<i64: 1, 128>}, {pipeline_mode = #tpu.pipeline_mode<synchronous>, transform_indices = @transform_10, window_bounds = array<i64: 128, 128>}, {pipeline_mode = #tpu.pipeline_mode<synchronous>, transform_indices = @transform_11, window_bounds = array<i64: 1, 128>}, {transform_indices = @transform_12, window_bounds = array<i64: 16, 128>}]} {
    %c0 = arith.constant 0 : index
    %c0_0 = arith.constant 0 : index
    %0 = vector.load %arg1[%c0, %c0_0] : memref<16x128xf32, #tpu.memory_space<vmem>>, vector<16x128xf32>
    %c0_1 = arith.constant 0 : index
    %c0_2 = arith.constant 0 : index
    %1 = vector.load %arg2[%c0_1, %c0_2] : memref<128x128xf32, #tpu.memory_space<vmem>>, vector<128x128xf32>
    %cst = arith.constant dense<0.000000e+00> : vector<16x128xf32>
    %2 = tpu.matmul %0, %1, %cst {dimension_numbers = #tpu.dot_dimension_numbers<[1], [0], [0], [1], [0, 0, 1, 1], [], []>} : vector<16x128xf32>, vector<128x128xf32>, vector<16x128xf32> -> vector<16x128xf32>
    %c0_3 = arith.constant 0 : index
    %c0_4 = arith.constant 0 : index
    %3 = vector.load %arg3[%c0_3, %c0_4] : memref<1x128xf32, #tpu.memory_space<vmem>>, vector<1x128xf32>
    %4 = vector.broadcast %3 : vector<1x128xf32> to vector<16x128xf32>
    %5 = arith.addf %2, %4 : vector<16x128xf32>
    %cst_5 = arith.constant 0.000000e+00 : f32
    %6 = vector.broadcast %cst_5 : f32 to vector<16x128xf32>
    %7 = arith.maximumf %5, %6 : vector<16x128xf32>
    %c0_6 = arith.constant 0 : index
    %c0_7 = arith.constant 0 : index
    %8 = vector.load %arg4[%c0_6, %c0_7] : memref<128x128xf32, #tpu.memory_space<vmem>>, vector<128x128xf32>
    %cst_8 = arith.constant dense<0.000000e+00> : vector<16x128xf32>
    %9 = tpu.matmul %7, %8, %cst_8 {dimension_numbers = #tpu.dot_dimension_numbers<[1], [0], [0], [1], [0, 0, 1, 1], [], []>} : vector<16x128xf32>, vector<128x128xf32>, vector<16x128xf32> -> vector<16x128xf32>
    %c0_9 = arith.constant 0 : index
    %c0_10 = arith.constant 0 : index
    %10 = vector.load %arg5[%c0_9, %c0_10] : memref<1x128xf32, #tpu.memory_space<vmem>>, vector<1x128xf32>
    %11 = vector.broadcast %10 : vector<1x128xf32> to vector<16x128xf32>
    %12 = arith.addf %9, %11 : vector<16x128xf32>
    %c0_11 = arith.constant 0 : index
    %c0_12 = arith.constant 0 : index
    %13 = vector.load %arg6[%c0_11, %c0_12] : memref<128x128xf32, #tpu.memory_space<vmem>>, vector<128x128xf32>
    %cst_13 = arith.constant dense<0.000000e+00> : vector<16x128xf32>
    %14 = tpu.matmul %0, %13, %cst_13 {dimension_numbers = #tpu.dot_dimension_numbers<[1], [0], [0], [1], [0, 0, 1, 1], [], []>} : vector<16x128xf32>, vector<128x128xf32>, vector<16x128xf32> -> vector<16x128xf32>
    %c0_14 = arith.constant 0 : index
    %c0_15 = arith.constant 0 : index
    %15 = vector.load %arg7[%c0_14, %c0_15] : memref<128x128xf32, #tpu.memory_space<vmem>>, vector<128x128xf32>
    %cst_16 = arith.constant dense<0.000000e+00> : vector<16x128xf32>
    %16 = tpu.matmul %12, %15, %cst_16 {dimension_numbers = #tpu.dot_dimension_numbers<[1], [0], [0], [1], [0, 0, 1, 1], [], []>} : vector<16x128xf32>, vector<128x128xf32>, vector<16x128xf32> -> vector<16x128xf32>
    %17 = arith.addf %14, %16 : vector<16x128xf32>
    %c0_17 = arith.constant 0 : index
    %c0_18 = arith.constant 0 : index
    %18 = vector.load %arg8[%c0_17, %c0_18] : memref<1x128xf32, #tpu.memory_space<vmem>>, vector<1x128xf32>
    %19 = vector.broadcast %18 : vector<1x128xf32> to vector<16x128xf32>
    %20 = arith.addf %17, %19 : vector<16x128xf32>
    %cst_19 = arith.constant 0.000000e+00 : f32
    %21 = vector.broadcast %cst_19 : f32 to vector<16x128xf32>
    %22 = arith.maximumf %20, %21 : vector<16x128xf32>
    %c0_20 = arith.constant 0 : index
    %c0_21 = arith.constant 0 : index
    %23 = vector.load %arg9[%c0_20, %c0_21] : memref<128x128xf32, #tpu.memory_space<vmem>>, vector<128x128xf32>
    %cst_22 = arith.constant dense<0.000000e+00> : vector<16x128xf32>
    %24 = tpu.matmul %22, %23, %cst_22 {dimension_numbers = #tpu.dot_dimension_numbers<[1], [0], [0], [1], [0, 0, 1, 1], [], []>} : vector<16x128xf32>, vector<128x128xf32>, vector<16x128xf32> -> vector<16x128xf32>
    %c0_23 = arith.constant 0 : index
    %c0_24 = arith.constant 0 : index
    %25 = vector.load %arg10[%c0_23, %c0_24] : memref<1x128xf32, #tpu.memory_space<vmem>>, vector<1x128xf32>
    %26 = vector.broadcast %25 : vector<1x128xf32> to vector<16x128xf32>
    %27 = arith.addf %24, %26 : vector<16x128xf32>
    %cst_25 = arith.constant 0.000000e+00 : f32
    %28 = vector.broadcast %cst_25 : f32 to vector<16x128xf32>
    %29 = arith.maximumf %27, %28 : vector<16x128xf32>
    %c0_26 = arith.constant 0 : index
    %c0_27 = arith.constant 0 : index
    %30 = vector.load %arg11[%c0_26, %c0_27] : memref<128x128xf32, #tpu.memory_space<vmem>>, vector<128x128xf32>
    %cst_28 = arith.constant dense<0.000000e+00> : vector<16x128xf32>
    %31 = tpu.matmul %29, %30, %cst_28 {dimension_numbers = #tpu.dot_dimension_numbers<[1], [0], [0], [1], [0, 0, 1, 1], [], []>} : vector<16x128xf32>, vector<128x128xf32>, vector<16x128xf32> -> vector<16x128xf32>
    %c0_29 = arith.constant 0 : index
    %c0_30 = arith.constant 0 : index
    %32 = vector.load %arg12[%c0_29, %c0_30] : memref<1x128xf32, #tpu.memory_space<vmem>>, vector<1x128xf32>
    %33 = vector.broadcast %32 : vector<1x128xf32> to vector<16x128xf32>
    %34 = arith.addf %31, %33 : vector<16x128xf32>
    %c0_31 = arith.constant 0 : index
    %c0_32 = arith.constant 0 : index
    %35 = vector.load %arg13[%c0_31, %c0_32] : memref<16x128xf32, #tpu.memory_space<vmem>>, vector<16x128xf32>
    tpu.vector_store %arg13[%c0_31, %c0_32], %34 {strides = array<i32>} : memref<16x128xf32, #tpu.memory_space<vmem>>, vector<16x128xf32>,
    return
  }
  func.func @transform_0(%arg0: i32) -> (i32, i32) {
    %c0_i32 = arith.constant 0 : i32
    %c0_i32_0 = arith.constant 0 : i32
    return %arg0, %c0_i32 : i32, i32
  }
  func.func @transform_1(%arg0: i32) -> (i32, i32) {
    %c0_i32 = arith.constant 0 : i32
    %c0_i32_0 = arith.constant 0 : i32
    %c0_i32_1 = arith.constant 0 : i32
    return %c0_i32, %c0_i32_0 : i32, i32
  }
  func.func @transform_2(%arg0: i32) -> (i32, i32) {
    %c0_i32 = arith.constant 0 : i32
    %c0_i32_0 = arith.constant 0 : i32
    %c0_i32_1 = arith.constant 0 : i32
    return %c0_i32, %c0_i32_0 : i32, i32
  }
  func.func @transform_3(%arg0: i32) -> (i32, i32) {
    %c0_i32 = arith.constant 0 : i32
    %c0_i32_0 = arith.constant 0 : i32
    %c0_i32_1 = arith.constant 0 : i32
    return %c0_i32, %c0_i32_0 : i32, i32
  }
  func.func @transform_4(%arg0: i32) -> (i32, i32) {
    %c0_i32 = arith.constant 0 : i32
    %c0_i32_0 = arith.constant 0 : i32
    %c0_i32_1 = arith.constant 0 : i32
    return %c0_i32, %c0_i32_0 : i32, i32
  }
  func.func @transform_5(%arg0: i32) -> (i32, i32) {
    %c0_i32 = arith.constant 0 : i32
    %c0_i32_0 = arith.constant 0 : i32
    %c0_i32_1 = arith.constant 0 : i32
    return %c0_i32, %c0_i32_0 : i32, i32
  }
  func.func @transform_6(%arg0: i32) -> (i32, i32) {
    %c0_i32 = arith.constant 0 : i32
    %c0_i32_0 = arith.constant 0 : i32
    %c0_i32_1 = arith.constant 0 : i32
    return %c0_i32, %c0_i32_0 : i32, i32
  }
  func.func @transform_7(%arg0: i32) -> (i32, i32) {
    %c0_i32 = arith.constant 0 : i32
    %c0_i32_0 = arith.constant 0 : i32
    %c0_i32_1 = arith.constant 0 : i32
    return %c0_i32, %c0_i32_0 : i32, i32
  }
  func.func @transform_8(%arg0: i32) -> (i32, i32) {
    %c0_i32 = arith.constant 0 : i32
    %c0_i32_0 = arith.constant 0 : i32
    %c0_i32_1 = arith.constant 0 : i32
    return %c0_i32, %c0_i32_0 : i32, i32
  }
  func.func @transform_9(%arg0: i32) -> (i32, i32) {
    %c0_i32 = arith.constant 0 : i32
    %c0_i32_0 = arith.constant 0 : i32
    %c0_i32_1 = arith.constant 0 : i32
    return %c0_i32, %c0_i32_0 : i32, i32
  }
  func.func @transform_10(%arg0: i32) -> (i32, i32) {
    %c0_i32 = arith.constant 0 : i32
    %c0_i32_0 = arith.constant 0 : i32
    %c0_i32_1 = arith.constant 0 : i32
    return %c0_i32, %c0_i32_0 : i32, i32
  }
  func.func @transform_11(%arg0: i32) -> (i32, i32) {
    %c0_i32 = arith.constant 0 : i32
    %c0_i32_0 = arith.constant 0 : i32
    %c0_i32_1 = arith.constant 0 : i32
    return %c0_i32, %c0_i32_0 : i32, i32
  }
  func.func @transform_12(%arg0: i32) -> (i32, i32) {
    %c0_i32 = arith.constant 0 : i32
    %c0_i32_0 = arith.constant 0 : i32
    return %arg0, %c0_i32 : i32, i32
  }
}

</mosaic_0001>

<bundles_post_ra>
// kernel: tpu_custom_call.1
= control target key start
LH: loop header
LB: loop body
LE: loop exit
PB: predicated region body
PF: predicated region fallthrough
CT: control target
= control target key end

     0   :  { %17 = vsyncpa [#allocation3], 0  ;;  %s1399_s0 = inlined_call_operand.hbm [shape: f32[16,128], index: 0, kind: input, shape index: {}]   ;;  %s1400_s1 = inlined_call_operand.hbm [shape: f32[128,128], index: 1, kind: input, shape index: {}]   ;;  %s1401_s2 = inlined_call_operand.vmem [shape: f32[1,128], index: 2, kind: input, shape index: {}]   ;;  %s1402_s3 = inlined_call_operand.hbm [shape: f32[128,128], index: 3, kind: input, shape index: {}]   ;;  %s1403_s4 = inlined_call_operand.vmem [shape: f32[1,128], index: 4, kind: input, shape index: {}]   ;;  %s1404_s5 = inlined_call_operand.hbm [shape: f32[128,128], index: 5, kind: input, shape index: {}]   ;;  %s1405_s6 = inlined_call_operand.hbm [shape: f32[128,128], index: 6, kind: input, shape index: {}]   ;;  %s1406_s7 = inlined_call_operand.vmem [shape: f32[1,128], index: 7, kind: input, shape index: {}]   ;;  %s1407_s8 = inlined_call_operand.hbm [shape: f32[128,128], index: 8, kind: input, shape index: {}]   ;;  %s1408_s9 = inlined_call_operand.vmem [shape: f32[1,128], index: 9, kind: input, shape index: {}]   ;;  %s1409_s10 = inlined_call_operand.hbm [shape: f32[128,128], index: 10, kind: input, shape index: {}]   ;;  %s1410_s11 = inlined_call_operand.vmem [shape: f32[1,128], index: 11, kind: input, shape index: {}]   ;;  %s1411_s12 = inlined_call_operand.hbm [shape: f32[16,128], index: 12, kind: output, shape index: {}]  }
   0x1   :  { %18 = vsyncpa [#allocation6], 0 }
   0x2   :  { %19 = vsyncpa [#allocation9], 0 }
   0x3   :  { %20 = vsyncpa [#allocation12], 0 }
   0x4   :  { %21 = vsyncpa [#allocation4], 0  ;;  %s1253_s21 = smov [#allocation5]   ;;  %s1254_s23 = smov [#allocation8]  }
   0x5   :  { %s39_s22 = sshll.u32 %s1253_s21, 4  ;;  %s67_s24 = sshll.u32 %s1254_s23, 4  ;;  %s40_s22 = int_to_ptr.vmem [resolvable:$true] %s39_s22  ;;  %s68_s24 = int_to_ptr.vmem [resolvable:$true] %s67_s24 }
   0x6   :  { %s1091_s25 = scalar_lea.vmem %s40_s22, 2048  ;;  %p1096_p1 = scmp.lt.s32.totalorder %s40_s22, %s40_s22 }
   0x7   :  { %p1092_p0 = scmp.ne.s32.totalorder %s40_s22, %s1091_s25  ;;  %p1097_p2 = scmp.lt.s32.totalorder %s1091_s25, %s1091_s25 }
   0x9   :  { %p1098_p3 = por %p1097_p2, %p1096_p1 }
   0xb   :  { %p1099_p4 = pnand %p1098_p3, %p1092_p0 }
   0xd   :  { %1102 = shalt.err (!%p1099_p4)
}
   0xe   :  { %s1255_s26 = smov 128   ;;  %s1256_s27 = smov 8  }
   0xf   :  { %45 = dma.hbm_to_vmem [thread:$0]  %s1400_s1, 2048, %s40_s22, [#allocation6], %s1255_s26, %s1255_s26, %s1256_s27  }
  0x10   :  { %s1111_s30 = scalar_lea.vmem %s68_s24, 2048  ;;  %p1116_p6 = scmp.lt.s32.totalorder %s68_s24, %s68_s24 }
  0x11   :  { %p1112_p5 = scmp.ne.s32.totalorder %s68_s24, %s1111_s30  ;;  %p1117_p7 = scmp.lt.s32.totalorder %s1111_s30, %s1111_s30 }
  0x13   :  { %p1118_p8 = por %p1117_p7, %p1116_p6 }
  0x15   :  { %p1119_p9 = pnand %p1118_p8, %p1112_p5 }
  0x17   :  { %1122 = shalt.err (!%p1119_p9)
}
  0x18   :  { %73 = dma.hbm_to_vmem [thread:$0]  %s1404_s5, 2048, %s68_s24, [#allocation9], %s1255_s26, %s1255_s26, %s1256_s27  }
  0x19   :  { %s1257_s15 = smov [#allocation11]   ;;  %s1258_s17 = smov [#allocation2]  }
  0x1a   :  { %s93_s16 = sshll.u32 %s1257_s15, 4  ;;  %s27_s18 = sshll.u32 %s1258_s17, 4  ;;  %s94_s16 = int_to_ptr.vmem [resolvable:$true] %s93_s16  ;;  %s28_s18 = int_to_ptr.vmem [resolvable:$true] %s27_s18 }
  0x1b   :  { %s1131_s1 = scalar_lea.vmem %s94_s16, 2048  ;;  %p1136_p11 = scmp.lt.s32.totalorder %s94_s16, %s94_s16 }
  0x1c   :  { %p1132_p10 = scmp.ne.s32.totalorder %s94_s16, %s1131_s1  ;;  %p1137_p12 = scmp.lt.s32.totalorder %s1131_s1, %s1131_s1 }
  0x1e   :  { %p1138_p13 = por %p1137_p12, %p1136_p11 }
  0x20   :  { %p1139_p0 = pnand %p1138_p13, %p1132_p10 }
  0x22   :  { %1142 = shalt.err (!%p1139_p0)
}
  0x23   :  { %99 = dma.hbm_to_vmem [thread:$0]  %s1407_s8, 2048, %s94_s16, [#allocation12], %s1255_s26, %s1255_s26, %s1256_s27  }
  0x24   :  { %s1151_s5 = scalar_lea.vmem %s28_s18, 256  ;;  %p1156_p2 = scmp.lt.s32.totalorder %s28_s18, %s28_s18 }
  0x25   :  { %p1152_p1 = scmp.ne.s32.totalorder %s28_s18, %s1151_s5  ;;  %p1157_p3 = scmp.lt.s32.totalorder %s1151_s5, %s1151_s5 }
  0x27   :  { %p1158_p4 = por %p1157_p3, %p1156_p2 }
  0x29   :  { %p1159_p5 = pnand %p1158_p4, %p1152_p1 }
  0x2b   :  { %1162 = shalt.err (!%p1159_p5)
}
  0x2c   :  { %33 = dma.hbm_to_vmem [thread:$0]  %s1399_s0, 256, %s28_s18, [#allocation3], %s1255_s26, %s1255_s26, %s1256_s27  }
  0x2d   :  { %s1259_s23 = smov [#allocation7]   ;;  %s1260_s25 = smov [#allocation10]  }
  0x2e   :  { %s53_s24 = sshll.u32 %s1259_s23, 4  ;;  %s79_s28 = sshll.u32 %s1260_s25, 4  ;;  %s54_s24 = int_to_ptr.vmem [resolvable:$true] %s53_s24  ;;  %s80_s28 = int_to_ptr.vmem [resolvable:$true] %s79_s28 }
  0x2f   :  { %s1171_s8 = scalar_lea.vmem %s54_s24, 2048  ;;  %p1176_p7 = scmp.lt.s32.totalorder %s54_s24, %s54_s24 }
  0x30   :  { %p1172_p6 = scmp.ne.s32.totalorder %s54_s24, %s1171_s8  ;;  %p1177_p8 = scmp.lt.s32.totalorder %s1171_s8, %s1171_s8 }
  0x32   :  { %p1178_p9 = por %p1177_p8, %p1176_p7 }
  0x34   :  { %p1179_p10 = pnand %p1178_p9, %p1172_p6 }
  0x36   :  { %1182 = shalt.err (!%p1179_p10)
}
  0x37   :  { %59 = dma.hbm_to_vmem [thread:$0]  %s1402_s3, 2048, %s54_s24, [#allocation6], %s1255_s26, %s1255_s26, %s1256_s27  }
  0x38   :  { %s1191_s0 = scalar_lea.vmem %s80_s28, 2048  ;;  %p1196_p12 = scmp.lt.s32.totalorder %s80_s28, %s80_s28 }
  0x39   :  { %p1192_p11 = scmp.ne.s32.totalorder %s80_s28, %s1191_s0  ;;  %p1197_p13 = scmp.lt.s32.totalorder %s1191_s0, %s1191_s0 }
  0x3b   :  { %p1198_p0 = por %p1197_p13, %p1196_p12 }
  0x3d   :  { %p1199_p1 = pnand %p1198_p0, %p1192_p11 }
  0x3f   :  { %1202 = shalt.err (!%p1199_p1)
}
  0x40   :  { %85 = dma.hbm_to_vmem [thread:$0]  %s1405_s6, 2048, %s80_s28, [#allocation9], %s1255_s26, %s1255_s26, %s1256_s27  }
  0x41   :  { %s1261_s15 = smov [#allocation13]  }
  0x42   :  { %s107_s16 = sshll.u32 %s1261_s15, 4  ;;  %s108_s16 = int_to_ptr.vmem [resolvable:$true] %s107_s16 }
  0x43   :  { %s1211_s17 = scalar_lea.vmem %s108_s16, 2048  ;;  %p1216_p3 = scmp.lt.s32.totalorder %s108_s16, %s108_s16 }
  0x44   :  { %p1212_p2 = scmp.ne.s32.totalorder %s108_s16, %s1211_s17  ;;  %p1217_p4 = scmp.lt.s32.totalorder %s1211_s17, %s1211_s17 }
  0x46   :  { %p1218_p5 = por %p1217_p4, %p1216_p3 }
  0x48   :  { %p1219_p6 = pnand %p1218_p5, %p1212_p2 }
  0x4a   :  { %1222 = shalt.err (!%p1219_p6)
}
  0x4b   :  { %113 = dma.hbm_to_vmem [thread:$0]  %s1409_s10, 2048, %s108_s16, [#allocation12], %s1255_s26, %s1255_s26, %s1256_s27  }
  0x4c   :  { %1243 = dma.done.wait [#allocation3], 256  }
  0x4d   :  { %1244 = vsyncadd [#allocation3], 4294967040 }
  0x4e   :  { %1245 = dma.done.wait [#allocation6], 4096  }
  0x4f   :  { %1246 = vsyncadd [#allocation6], 4294963200 }
  0x50   :  { %1247 = dma.done.wait [#allocation9], 4096  }
  0x51   :  { %1248 = vsyncadd [#allocation9], 4294963200 }
  0x52   :  { %1249 = dma.done.wait [#allocation12], 4096  }
  0x53   :  { %1250 = vsyncadd [#allocation12], 4294963200  ;;  %v154_v0 = vld [vmem:[#allocation5 + $0x78] sm:$0xff]  ;;  %v153_v1 = vld [vmem:[#allocation5 + $0x70] sm:$0xff]  ;;  %s1262_s22 = smov [#allocation14]  }
  0x54   :  { %863 = vmatprep.subr.mxu0 %v154_v0  ;;  %v152_v2 = vld [vmem:[#allocation5 + $0x68] sm:$0xff]  ;;  %v151_v3 = vld [vmem:[#allocation5 + $0x60] sm:$0xff]  ;;  %v1370_v4 = vld [vmem:[#allocation2] sm:$0xff]  ;;  %s735_s23 = sshll.u32 %s1262_s22, 4  ;;  %s736_s23 = int_to_ptr.vmem [resolvable:$true] %s735_s23 }
  0x55   :  { %864 = vmatpush3.msra.mxu0 %v154_v0  ;;  %v150_v5 = vld [vmem:[#allocation5 + $0x58] sm:$0xff]  ;;  %895 = vmatprep.mubr.f32.mxu0 %v1370_v4  ;;  %v253_v7 = vld [vmem:[#allocation7 + $0x70] sm:$0xff]  ;;  %v252_v9 = vld [vmem:[#allocation7 + $0x68] sm:$0xff]  ;;  %p1228_p8 = scmp.lt.s32.totalorder %s736_s23, %s736_s23 }
  0x56   :  { %865 = vmatprep.subr.mxu0 %v153_v1  ;;  %v254_v6 = vld [vmem:[#allocation7 + $0x78] sm:$0xff]  ;;  %v149_v8 = vld [vmem:[#allocation5 + $0x50] sm:$0xff]  ;;  %v148_v10 = vld [vmem:[#allocation5 + $0x48] sm:$0xff] }
  0x57   :  { %866 = vmatpush3.msra.mxu0 %v153_v1  ;;  %898 = vmatprep.subr.mxu1 %v254_v6  ;;  %v251_v11 = vld [vmem:[#allocation7 + $0x60] sm:$0xff]  ;;  %v250_v13 = vld [vmem:[#allocation7 + $0x58] sm:$0xff]  ;;  %v249_v15 = vld [vmem:[#allocation7 + $0x50] sm:$0xff] }
  0x58   :  { %867 = vmatprep.subr.mxu0 %v152_v2  ;;  %899 = vmatpush3.msra.mxu1 %v254_v6  ;;  %v147_v12 = vld [vmem:[#allocation5 + $0x40] sm:$0xff]  ;;  %v146_v14 = vld [vmem:[#allocation5 + $0x38] sm:$0xff]  ;;  %v145_v16 = vld [vmem:[#allocation5 + $0x30] sm:$0xff] }
  0x59   :  { %868 = vmatpush3.msra.mxu0 %v152_v2  ;;  %900 = vmatprep.subr.mxu1 %v253_v7  ;;  %v248_v17 = vld [vmem:[#allocation7 + $0x48] sm:$0xff]  ;;  %v247_v19 = vld [vmem:[#allocation7 + $0x40] sm:$0xff]  ;;  %v246_v21 = vld [vmem:[#allocation7 + $0x38] sm:$0xff] }
  0x5a   :  { %869 = vmatprep.subr.mxu0 %v151_v3  ;;  %901 = vmatpush3.msra.mxu1 %v253_v7  ;;  %v144_v18 = vld [vmem:[#allocation5 + $0x28] sm:$0xff]  ;;  %v143_v20 = vld [vmem:[#allocation5 + $0x20] sm:$0xff]  ;;  %v142_v22 = vld [vmem:[#allocation5 + $0x18] sm:$0xff] }
  0x5b   :  { %870 = vmatpush3.msra.mxu0 %v151_v3  ;;  %902 = vmatprep.subr.mxu1 %v252_v9  ;;  %v245_v23 = vld [vmem:[#allocation7 + $0x30] sm:$0xff]  ;;  %v244_v25 = vld [vmem:[#allocation7 + $0x28] sm:$0xff]  ;;  %v243_v27 = vld [vmem:[#allocation7 + $0x20] sm:$0xff] }
  0x5c   :  { %871 = vmatprep.subr.mxu0 %v150_v5  ;;  %903 = vmatpush3.msra.mxu1 %v252_v9  ;;  %v141_v24 = vld [vmem:[#allocation5 + $0x10] sm:$0xff]  ;;  %v140_v26 = vld [vmem:[#allocation5 + $0x8] sm:$0xff]  ;;  %v139_v28 = vld [vmem:[#allocation5] sm:$0xff] }
  0x5d   :  { %872 = vmatpush3.msra.mxu0 %v150_v5  ;;  %904 = vmatprep.subr.mxu1 %v251_v11  ;;  %v1373_v29 = vld [vmem:[#allocation2 + $0x8] sm:$0xff]  ;;  %v241_v31 = vld [vmem:[#allocation7 + $0x10] sm:$0xff]  ;;  %v240_v32 = vld [vmem:[#allocation7 + $0x8] sm:$0xff] }
  0x5e   :  { %873 = vmatprep.subr.mxu0 %v149_v8  ;;  %905 = vmatpush3.msra.mxu1 %v251_v11  ;;  %v242_v30 = vld [vmem:[#allocation7 + $0x18] sm:$0xff]  ;;  %v239_v33 = vld [vmem:[#allocation7] sm:$0xff]  ;;  %v367_v36 = vld [vmem:[#allocation10 + $0x70] sm:$0xff] }
  0x5f   :  { %874 = vmatpush3.msra.mxu0 %v149_v8  ;;  %906 = vmatprep.subr.mxu1 %v250_v13  ;;  %v352_v34 = vld [vmem:[#allocation8 + $0x78] sm:$0xff]  ;;  %v366_v37 = vld [vmem:[#allocation10 + $0x68] sm:$0xff]  ;;  %v365_v38 = vld [vmem:[#allocation10 + $0x60] sm:$0xff] }
  0x60   :  { %875 = vmatprep.subr.mxu0 %v148_v10  ;;  %907 = vmatpush3.msra.mxu1 %v250_v13  ;;  %v368_v35 = vld [vmem:[#allocation10 + $0x78] sm:$0xff]  ;;  %v363_v40 = vld [vmem:[#allocation10 + $0x50] sm:$0xff]  ;;  %v362_v41 = vld [vmem:[#allocation10 + $0x48] sm:$0xff] }
  0x61   :  { %876 = vmatpush3.msra.mxu0 %v148_v10  ;;  %908 = vmatprep.subr.mxu1 %v249_v15  ;;  %v364_v39 = vld [vmem:[#allocation10 + $0x58] sm:$0xff]  ;;  %v361_v42 = vld [vmem:[#allocation10 + $0x40] sm:$0xff]  ;;  %v359_v44 = vld [vmem:[#allocation10 + $0x30] sm:$0xff] }
  0x62   :  { %877 = vmatprep.subr.mxu0 %v147_v12  ;;  %909 = vmatpush3.msra.mxu1 %v249_v15  ;;  %v360_v43 = vld [vmem:[#allocation10 + $0x38] sm:$0xff]  ;;  %v358_v45 = vld [vmem:[#allocation10 + $0x28] sm:$0xff]  ;;  %v357_v46 = vld [vmem:[#allocation10 + $0x20] sm:$0xff] }
  0x63   :  { %878 = vmatpush3.msra.mxu0 %v147_v12  ;;  %910 = vmatprep.subr.mxu1 %v248_v17  ;;  %v356_v47 = vld [vmem:[#allocation10 + $0x18] sm:$0xff]  ;;  %v750_v48 = vld [vmem:[%s1401_s2] ss:$0 sm:$0xff]  ;;  %v350_v56 = vld [vmem:[#allocation8 + $0x68] sm:$0xff] }
  0x64   :  { %879 = vmatprep.subr.mxu0 %v146_v14  ;;  %911 = vmatpush3.msra.mxu1 %v248_v17  ;;  %v351_v55 = vld [vmem:[#allocation8 + $0x70] sm:$0xff]  ;;  %v349_v57 = vld [vmem:[#allocation8 + $0x60] sm:$0xff]  ;;  %v348_v58 = vld [vmem:[#allocation8 + $0x58] sm:$0xff] }
  0x65   :  { %880 = vmatpush3.msra.mxu0 %v146_v14  ;;  %912 = vmatprep.subr.mxu1 %v247_v19  ;;  %v347_v59 = vld [vmem:[#allocation8 + $0x50] sm:$0xff]  ;;  %v346_v60 = vld [vmem:[#allocation8 + $0x48] sm:$0xff]  ;;  %v345_v61 = vld [vmem:[#allocation8 + $0x40] sm:$0xff] }
  0x66   :  { %881 = vmatprep.subr.mxu0 %v145_v16  ;;  %913 = vmatpush3.msra.mxu1 %v247_v19  ;;  %v344_v62 = vld [vmem:[#allocation8 + $0x38] sm:$0xff]  ;;  %v343_v63 = vld [vmem:[#allocation8 + $0x30] sm:$0xff]  ;;  %v342_v0 = vld [vmem:[#allocation8 + $0x28] sm:$0xff] }
  0x67   :  { %882 = vmatpush3.msra.mxu0 %v145_v16  ;;  %914 = vmatprep.subr.mxu1 %v246_v21  ;;  %v341_v1 = vld [vmem:[#allocation8 + $0x20] sm:$0xff]  ;;  %v340_v2 = vld [vmem:[#allocation8 + $0x18] sm:$0xff]  ;;  %v339_v3 = vld [vmem:[#allocation8 + $0x10] sm:$0xff] }
  0x68   :  { %883 = vmatprep.subr.mxu0 %v144_v18  ;;  %915 = vmatpush3.msra.mxu1 %v246_v21  ;;  %v338_v5 = vld [vmem:[#allocation8 + $0x8] sm:$0xff]  ;;  %v337_v7 = vld [vmem:[#allocation8] sm:$0xff]  ;;  %v545_v9 = vld [vmem:[#allocation11 + $0x78] sm:$0xff] }
  0x69   :  { %884 = vmatpush3.msra.mxu0 %v144_v18  ;;  %916 = vmatprep.subr.mxu1 %v245_v23  ;;  %v354_v6 = vld [vmem:[#allocation10 + $0x8] sm:$0xff]  ;;  %v353_v8 = vld [vmem:[#allocation10] sm:$0xff]  ;;  %v751_v11 = vld [vmem:[%s1403_s4] ss:$0 sm:$0xff] }
  0x6a   :  { %885 = vmatprep.subr.mxu0 %v143_v20  ;;  %917 = vmatpush3.msra.mxu1 %v245_v23  ;;  %v544_v15 = vld [vmem:[#allocation11 + $0x70] sm:$0xff]  ;;  %v543_v16 = vld [vmem:[#allocation11 + $0x68] sm:$0xff]  ;;  %v542_v17 = vld [vmem:[#allocation11 + $0x60] sm:$0xff] }
  0x6b   :  { %886 = vmatpush3.msra.mxu0 %v143_v20  ;;  %918 = vmatprep.subr.mxu1 %v244_v25  ;;  %v541_v18 = vld [vmem:[#allocation11 + $0x58] sm:$0xff]  ;;  %v540_v19 = vld [vmem:[#allocation11 + $0x50] sm:$0xff]  ;;  %v539_v20 = vld [vmem:[#allocation11 + $0x48] sm:$0xff] }
  0x6c   :  { %887 = vmatprep.subr.mxu0 %v142_v22  ;;  %919 = vmatpush3.msra.mxu1 %v244_v25  ;;  %v538_v21 = vld [vmem:[#allocation11 + $0x40] sm:$0xff]  ;;  %v536_v23 = vld [vmem:[#allocation11 + $0x30] sm:$0xff] }
  0x6d   :  { %888 = vmatpush3.msra.mxu0 %v142_v22  ;;  %920 = vmatprep.subr.mxu1 %v243_v27  ;;  %v537_v22 = vld [vmem:[#allocation11 + $0x38] sm:$0xff]  ;;  %v534_v25 = vld [vmem:[#allocation11 + $0x20] sm:$0xff] }
  0x6e   :  { %889 = vmatprep.subr.mxu0 %v141_v24  ;;  %921 = vmatpush3.msra.mxu1 %v243_v27  ;;  %v532_v27 = vld [vmem:[#allocation11 + $0x10] sm:$0xff] }
  0x6f   :  { %890 = vmatpush3.msra.mxu0 %v141_v24  ;;  %922 = vmatprep.subr.mxu1 %v242_v30  ;;  %v535_v24 = vld [vmem:[#allocation11 + $0x28] sm:$0xff] }
  0x70   :  { %891 = vmatprep.subr.mxu0 %v140_v26  ;;  %923 = vmatpush3.msra.mxu1 %v242_v30  ;;  %v645_v30 = vld [vmem:[#allocation13 + $0x78] sm:$0xff] }
  0x71   :  { %892 = vmatpush3.msra.mxu0 %v140_v26  ;;  %924 = vmatprep.subr.mxu1 %v241_v31  ;;  %v533_v26 = vld [vmem:[#allocation11 + $0x18] sm:$0xff] }
  0x72   :  { %893 = vmatprep.subr.mxu0 %v139_v28  ;;  %925 = vmatpush3.msra.mxu1 %v241_v31  ;;  %v644_v31 = vld [vmem:[#allocation13 + $0x70] sm:$0xff] }
  0x73   :  { %894 = vmatpush3.msra.mxu0 %v139_v28  ;;  %926 = vmatprep.subr.mxu1 %v240_v32  ;;  %v531_v28 = vld [vmem:[#allocation11 + $0x8] sm:$0xff] }
  0x74   :  { %896 = vmatmul.mubr.f32.vlgmr.msra.gmra.mxu0 %v1373_v29  ;;  %927 = vmatpush3.msra.mxu1 %v240_v32  ;;  %v643_v32 = vld [vmem:[#allocation13 + $0x68] sm:$0xff] }
  0x75   :  { %928 = vmatprep.subr.mxu1 %v239_v33  ;;  %933 = vmatprep.subr.mxu0 %v368_v35 }
  0x76   :  { %929 = vmatpush3.msra.mxu1 %v239_v33  ;;  %934 = vmatpush3.msra.mxu0 %v368_v35  ;;  %v642_v33 = vld [vmem:[#allocation13 + $0x60] sm:$0xff]  ;;  %v640_v35 = vld [vmem:[#allocation13 + $0x50] sm:$0xff] }
  0x77   :  { %968 = vmatprep.subr.mxu1 %v352_v34  ;;  %935 = vmatprep.subr.mxu0 %v367_v36 }
  0x78   :  { %936 = vmatpush3.msra.mxu0 %v367_v36  ;;  %v639_v36 = vld [vmem:[#allocation13 + $0x48] sm:$0xff] }
  0x79   :  { %937 = vmatprep.subr.mxu0 %v366_v37 }
  0x7a   :  { %938 = vmatpush3.msra.mxu0 %v366_v37  ;;  %v638_v37 = vld [vmem:[#allocation13 + $0x40] sm:$0xff] }
  0x7b   :  { %939 = vmatprep.subr.mxu0 %v365_v38 }
  0x7c   :  { %940 = vmatpush3.msra.mxu0 %v365_v38  ;;  %v637_v38 = vld [vmem:[#allocation13 + $0x38] sm:$0xff] }
  0x7d   :  { %941 = vmatprep.subr.mxu0 %v364_v39 }
  0x7e   :  { %942 = vmatpush3.msra.mxu0 %v364_v39  ;;  %v636_v39 = vld [vmem:[#allocation13 + $0x30] sm:$0xff] }
  0x7f   :  { %943 = vmatprep.subr.mxu0 %v363_v40 }
  0x80   :  { %944 = vmatpush3.msra.mxu0 %v363_v40  ;;  %v635_v40 = vld [vmem:[#allocation13 + $0x28] sm:$0xff] }
  0x81   :  { %945 = vmatprep.subr.mxu0 %v362_v41 }
  0x82   :  { %946 = vmatpush3.msra.mxu0 %v362_v41  ;;  %v634_v41 = vld [vmem:[#allocation13 + $0x20] sm:$0xff] }
  0x83   :  { %947 = vmatprep.subr.mxu0 %v361_v42 }
  0x84   :  { %948 = vmatpush3.msra.mxu0 %v361_v42 }
  0x85   :  { %949 = vmatprep.subr.mxu0 %v360_v43 }
  0x86   :  { %950 = vmatpush3.msra.mxu0 %v360_v43 }
  0x87   :  { %951 = vmatprep.subr.mxu0 %v359_v44 }
  0x88   :  { %952 = vmatpush3.msra.mxu0 %v359_v44 }
  0x89   :  { %953 = vmatprep.subr.mxu0 %v358_v45 }
  0x8a   :  { %954 = vmatpush3.msra.mxu0 %v358_v45  ;;  %v752_v45 = vld [vmem:[%s1406_s7] ss:$0 sm:$0xff] }
  0x8b   :  { %955 = vmatprep.subr.mxu0 %v357_v46 }
  0x8c   :  { %956 = vmatpush3.msra.mxu0 %v357_v46 }
  0x8d   :  { %957 = vmatprep.subr.mxu0 %v356_v47 }
  0x8e   :  { %958 = vmatpush3.msra.mxu0 %v356_v47 }
 0x134   :  { %v897_v49 = vpop.f32.mrf.mxu0 }
 0x135   :  { %v234_v50 = vadd.f32 %v897_v49, %v750_v48 }
 0x136   :  { %v228_v51 = vpop.f32.mrf.mxu0 }
 0x137   :  { %v229_v52 = vadd.f32 %v750_v48, %v228_v51  ;;  %v238_v54 = vmax.f32 %v234_v50, 0.0 }
 0x139   :  { %v237_v53 = vmax.f32 %v229_v52, 0.0 }
 0x13b   :  { %930 = vmatprep.mubr.f32.mxu1 %v237_v53  ;;  %v633_v53 = vld [vmem:[#allocation13 + $0x18] sm:$0xff] }
 0x13c   :  { %931 = vmatmul.mubr.f32.vlgmr.msra.gmra.mxu1 %v238_v54  ;;  %v632_v54 = vld [vmem:[#allocation13 + $0x10] sm:$0xff] }
 0x13d   :  { %969 = vmatpush3.msra.mxu1 %v352_v34  ;;  %1000 = vmatprep.mubr.f32.mxu1 %v1370_v4  ;;  %v355_v4 = vld [vmem:[#allocation10 + $0x10] sm:$0xff]  ;;  %v641_v34 = vld [vmem:[#allocation13 + $0x58] sm:$0xff] }
 0x13e   :  { %970 = vmatprep.subr.mxu1 %v351_v55  ;;  %959 = vmatprep.subr.mxu0 %v355_v4 }
 0x13f   :  { %971 = vmatpush3.msra.mxu1 %v351_v55  ;;  %960 = vmatpush3.msra.mxu0 %v355_v4  ;;  %v631_v55 = vld [vmem:[#allocation13 + $0x8] sm:$0xff] }
 0x140   :  { %972 = vmatprep.subr.mxu1 %v350_v56  ;;  %961 = vmatprep.subr.mxu0 %v354_v6 }
 0x141   :  { %973 = vmatpush3.msra.mxu1 %v350_v56  ;;  %962 = vmatpush3.msra.mxu0 %v354_v6  ;;  %v630_v56 = vld [vmem:[#allocation13] sm:$0xff] }
 0x142   :  { %974 = vmatprep.subr.mxu1 %v349_v57  ;;  %963 = vmatprep.subr.mxu0 %v353_v8 }
 0x143   :  { %975 = vmatpush3.msra.mxu1 %v349_v57  ;;  %964 = vmatpush3.msra.mxu0 %v353_v8  ;;  %v753_v57 = vld [vmem:[%s1408_s9] ss:$0 sm:$0xff]  ;;  %s1223_s9 = scalar_lea.vmem %s736_s23, 256 }
 0x144   :  { %976 = vmatprep.subr.mxu1 %v348_v58  ;;  %1003 = vmatprep.subr.mxu0 %v545_v9  ;;  %p1224_p7 = scmp.ne.s32.totalorder %s736_s23, %s1223_s9  ;;  %p1229_p9 = scmp.lt.s32.totalorder %s1223_s9, %s1223_s9 }
 0x145   :  { %977 = vmatpush3.msra.mxu1 %v348_v58 }
 0x146   :  { %978 = vmatprep.subr.mxu1 %v347_v59  ;;  %p1230_p10 = por %p1229_p9, %p1228_p8 }
 0x147   :  { %979 = vmatpush3.msra.mxu1 %v347_v59 }
 0x148   :  { %980 = vmatprep.subr.mxu1 %v346_v60  ;;  %p1231_p11 = pnand %p1230_p10, %p1224_p7 }
 0x149   :  { %981 = vmatpush3.msra.mxu1 %v346_v60 }
 0x14a   :  { %982 = vmatprep.subr.mxu1 %v345_v61 }
 0x14b   :  { %983 = vmatpush3.msra.mxu1 %v345_v61 }
 0x14c   :  { %984 = vmatprep.subr.mxu1 %v344_v62 }
 0x14d   :  { %985 = vmatpush3.msra.mxu1 %v344_v62 }
 0x14e   :  { %986 = vmatprep.subr.mxu1 %v343_v63 }
 0x14f   :  { %987 = vmatpush3.msra.mxu1 %v343_v63 }
 0x150   :  { %988 = vmatprep.subr.mxu1 %v342_v0 }
 0x151   :  { %989 = vmatpush3.msra.mxu1 %v342_v0  ;;  %v754_v0 = vld [vmem:[%s1410_s11] ss:$0 sm:$0xff] }
 0x152   :  { %990 = vmatprep.subr.mxu1 %v341_v1 }
 0x153   :  { %991 = vmatpush3.msra.mxu1 %v341_v1 }
 0x154   :  { %992 = vmatprep.subr.mxu1 %v340_v2 }
 0x155   :  { %993 = vmatpush3.msra.mxu1 %v340_v2 }
 0x156   :  { %994 = vmatprep.subr.mxu1 %v339_v3 }
 0x157   :  { %995 = vmatpush3.msra.mxu1 %v339_v3 }
 0x158   :  { %996 = vmatprep.subr.mxu1 %v338_v5 }
 0x159   :  { %997 = vmatpush3.msra.mxu1 %v338_v5 }
 0x15a   :  { %998 = vmatprep.subr.mxu1 %v337_v7 }
 0x15b   :  { %999 = vmatpush3.msra.mxu1 %v337_v7 }
 0x15c   :  { %1001 = vmatmul.mubr.f32.vlgmr.msra.gmra.mxu1 %v1373_v29  ;;  %v530_v29 = vld [vmem:[#allocation11] sm:$0xff]  ;;  %1038 = vmatprep.subr.mxu1 %v645_v30 }
 0x15d   :  { %1039 = vmatpush3.msra.mxu1 %v645_v30 }
 0x15e   :  { %1040 = vmatprep.subr.mxu1 %v644_v31 }
 0x15f   :  { %1041 = vmatpush3.msra.mxu1 %v644_v31 }
 0x160   :  { %1042 = vmatprep.subr.mxu1 %v643_v32 }
 0x161   :  { %1043 = vmatpush3.msra.mxu1 %v643_v32 }
 0x162   :  { %1044 = vmatprep.subr.mxu1 %v642_v33 }
 0x163   :  { %1045 = vmatpush3.msra.mxu1 %v642_v33 }
 0x164   :  { %1046 = vmatprep.subr.mxu1 %v641_v34 }
 0x165   :  { %1047 = vmatpush3.msra.mxu1 %v641_v34 }
 0x166   :  { %1048 = vmatprep.subr.mxu1 %v640_v35 }
 0x167   :  { %1049 = vmatpush3.msra.mxu1 %v640_v35 }
 0x168   :  { %1050 = vmatprep.subr.mxu1 %v639_v36 }
 0x169   :  { %1051 = vmatpush3.msra.mxu1 %v639_v36 }
 0x16a   :  { %1052 = vmatprep.subr.mxu1 %v638_v37 }
 0x16b   :  { %1053 = vmatpush3.msra.mxu1 %v638_v37 }
 0x16c   :  { %1054 = vmatprep.subr.mxu1 %v637_v38 }
 0x16d   :  { %1055 = vmatpush3.msra.mxu1 %v637_v38 }
 0x16e   :  { %1056 = vmatprep.subr.mxu1 %v636_v39 }
 0x16f   :  { %1057 = vmatpush3.msra.mxu1 %v636_v39 }
 0x170   :  { %1058 = vmatprep.subr.mxu1 %v635_v40 }
 0x171   :  { %1059 = vmatpush3.msra.mxu1 %v635_v40 }
 0x172   :  { %1060 = vmatprep.subr.mxu1 %v634_v41 }
 0x173   :  { %1061 = vmatpush3.msra.mxu1 %v634_v41 }
 0x174   :  { %1062 = vmatprep.subr.mxu1 %v633_v53 }
 0x175   :  { %1063 = vmatpush3.msra.mxu1 %v633_v53 }
 0x176   :  { %1064 = vmatprep.subr.mxu1 %v632_v54 }
 0x177   :  { %1065 = vmatpush3.msra.mxu1 %v632_v54 }
 0x178   :  { %1066 = vmatprep.subr.mxu1 %v631_v55 }
 0x179   :  { %1067 = vmatpush3.msra.mxu1 %v631_v55 }
 0x17a   :  { %1068 = vmatprep.subr.mxu1 %v630_v56 }
 0x17b   :  { %1069 = vmatpush3.msra.mxu1 %v630_v56 }
 0x1fc   :  { %v932_v10 = vpop.f32.mrf.mxu1 }
 0x1fd   :  { %v334_v14 = vadd.f32 %v932_v10, %v751_v11 }
 0x1fe   :  { %v328_v12 = vpop.f32.mrf.mxu1 }
 0x1ff   :  { %v329_v13 = vadd.f32 %v751_v11, %v328_v12 }
 0x201   :  { %965 = vmatprep.mubr.f32.mxu0 %v329_v13 }
 0x202   :  { %966 = vmatmul.mubr.f32.vlgmr.msra.gmra.mxu0 %v334_v14 }
 0x203   :  { %1004 = vmatpush3.msra.mxu0 %v545_v9 }
 0x204   :  { %1005 = vmatprep.subr.mxu0 %v544_v15 }
 0x205   :  { %1006 = vmatpush3.msra.mxu0 %v544_v15 }
 0x206   :  { %1007 = vmatprep.subr.mxu0 %v543_v16 }
 0x207   :  { %1008 = vmatpush3.msra.mxu0 %v543_v16 }
 0x208   :  { %1009 = vmatprep.subr.mxu0 %v542_v17 }
 0x209   :  { %1010 = vmatpush3.msra.mxu0 %v542_v17 }
 0x20a   :  { %1011 = vmatprep.subr.mxu0 %v541_v18 }
 0x20b   :  { %1012 = vmatpush3.msra.mxu0 %v541_v18 }
 0x20c   :  { %1013 = vmatprep.subr.mxu0 %v540_v19 }
 0x20d   :  { %1014 = vmatpush3.msra.mxu0 %v540_v19 }
 0x20e   :  { %1015 = vmatprep.subr.mxu0 %v539_v20 }
 0x20f   :  { %1016 = vmatpush3.msra.mxu0 %v539_v20 }
 0x210   :  { %1017 = vmatprep.subr.mxu0 %v538_v21 }
 0x211   :  { %1018 = vmatpush3.msra.mxu0 %v538_v21 }
 0x212   :  { %1019 = vmatprep.subr.mxu0 %v537_v22 }
 0x213   :  { %1020 = vmatpush3.msra.mxu0 %v537_v22 }
 0x214   :  { %1021 = vmatprep.subr.mxu0 %v536_v23 }
 0x215   :  { %1022 = vmatpush3.msra.mxu0 %v536_v23 }
 0x216   :  { %1023 = vmatprep.subr.mxu0 %v535_v24 }
 0x217   :  { %1024 = vmatpush3.msra.mxu0 %v535_v24 }
 0x218   :  { %1025 = vmatprep.subr.mxu0 %v534_v25 }
 0x219   :  { %1026 = vmatpush3.msra.mxu0 %v534_v25 }
 0x21a   :  { %1027 = vmatprep.subr.mxu0 %v533_v26 }
 0x21b   :  { %1028 = vmatpush3.msra.mxu0 %v533_v26 }
 0x21c   :  { %1029 = vmatprep.subr.mxu0 %v532_v27  ;;  %v1002_v42 = vpop.f32.mrf.mxu1 }
 0x21d   :  { %1030 = vmatpush3.msra.mxu0 %v532_v27 }
 0x21e   :  { %1031 = vmatprep.subr.mxu0 %v531_v28  ;;  %v510_v46 = vpop.f32.mrf.mxu1 }
 0x21f   :  { %1032 = vmatpush3.msra.mxu0 %v531_v28 }
 0x220   :  { %1033 = vmatprep.subr.mxu0 %v530_v29 }
 0x221   :  { %1034 = vmatpush3.msra.mxu0 %v530_v29 }
 0x2c2   :  { %v967_v43 = vpop.f32.mrf.mxu0 }
 0x2c3   :  { %v516_v44 = vadd.f32 %v1002_v42, %v967_v43 }
 0x2c4   :  { %v435_v47 = vpop.f32.mrf.mxu0 }
 0x2c5   :  { %v511_v48 = vadd.f32 %v510_v46, %v435_v47  ;;  %v527_v49 = vadd.f32 %v752_v45, %v516_v44 }
 0x2c7   :  { %v526_v50 = vadd.f32 %v752_v45, %v511_v48  ;;  %v529_v52 = vmax.f32 %v527_v49, 0.0 }
 0x2c9   :  { %v528_v51 = vmax.f32 %v526_v50, 0.0 }
 0x2cb   :  { %1035 = vmatprep.mubr.f32.mxu0 %v528_v51 }
 0x2cc   :  { %1036 = vmatmul.mubr.f32.vlgmr.msra.gmra.mxu0 %v529_v52 }
 0x38c   :  { %v1037_v58 = vpop.f32.mrf.mxu0 }
 0x38d   :  { %v625_v59 = vadd.f32 %v1037_v58, %v753_v57 }
 0x38e   :  { %v619_v60 = vpop.f32.mrf.mxu0 }
 0x38f   :  { %v620_v61 = vadd.f32 %v753_v57, %v619_v60  ;;  %v629_v63 = vmax.f32 %v625_v59, 0.0 }
 0x391   :  { %v628_v62 = vmax.f32 %v620_v61, 0.0 }
 0x393   :  { %1070 = vmatprep.mubr.f32.mxu1 %v628_v62 }
 0x394   :  { %1071 = vmatmul.mubr.f32.vlgmr.msra.gmra.mxu1 %v629_v63 }
 0x454   :  { %v1072_v1 = vpop.f32.mrf.mxu1 }
 0x455   :  { %v725_v2 = vadd.f32 %v1072_v1, %v754_v0 }
 0x456   :  { %v719_v3 = vpop.f32.mrf.mxu1 }
 0x457   :  { %729 = vst [vmem:[#allocation14 + $0x8] sm:$0xff] %v725_v2  ;;  %v720_v4 = vadd.f32 %v754_v0, %v719_v3 }
 0x459   :  { %728 = vst [vmem:[#allocation14] sm:$0xff] %v720_v4 }
 0x45a   :  { %1234 = shalt.err (!%p1231_p11)
}
 0x45b   :  { %741 = dma.vmem_to_hbm [thread:$0]  %s736_s23, 256, %s1411_s12, [#allocation4], %s1255_s26, %s1255_s26, %s1256_s27  }
 0x45c   :  { %1251 = dma.done.wait [#allocation4], 256  }
 0x45d   :  { %1252 = vsyncadd [#allocation4], 4294967040 }
 0x45e   :  { %745 = vsyncpa [#allocation3], 1 }
 0x45f   :  { %746 = vsyncpa [#allocation6], 1 }
 0x460   :  { %747 = vsyncpa [#allocation9], 1 }
 0x461   :  { %748 = vsyncpa [#allocation12], 1 }
 0x462   :  { %749 = vsyncpa [#allocation4], 1 }

</bundles_post_ra>
